<compile_context>
chip_gen: v7x
topology: tpu7x:2x2x1
jax: 0.10.0
libtpu: 0.0.40
codegen_flags: <defaults>
</compile_context>

<pallas_src>
import jax
import jax.numpy as jnp
from jax.experimental import pallas as pl
from jax.experimental.pallas import tpu as pltpu

IN_FEATURES = 2048
HIDDEN = 128
OUT = 1


def _round_up(n, m):
    return ((n + m - 1) // m) * m


def _discriminator_kernel(x_ref, w1_ref, b1_ref, w2_ref, b2_ref, o_ref):
    # Linear 1 on the MXU: bf16 x bf16 -> f32 accumulation.
    h = jnp.dot(x_ref[...].astype(jnp.bfloat16), w1_ref[...],
                preferred_element_type=jnp.float32)
    h = h + b1_ref[...]                       # (TB, 128) + (1, 128)

    # Dropout(0.5): identity in eval mode.
    # TODO(synk): in-kernel training-mode dropout via pltpu.prng_random_bits.

    # Linear 2 (out_features = 1): VPU lane multiply + XLU cross-lane sum
    # instead of an N=1 MXU matmul; keeps the MXU dedicated to the big GEMM.
    logit = jnp.sum(h * w2_ref[...], axis=-1, keepdims=True) + b2_ref[0, 0]

    # Sigmoid on the EUP. Output last dim is 1 (tiny volume); lane-dense
    # repacking is not worth it at this size.
    o_ref[...] = jax.nn.sigmoid(logit).astype(o_ref.dtype)


def discriminator_forward(x, w1, b1, w2, b2, *, block_b=512):
    """x: [B, 2048] f32 ; w1: [2048,128] ; b1: [1,128] ; w2: [128,1] ; b2: [1,1].

    Returns sigmoid((dropout(x @ w1 + b1)) @ w2 + b2) as [B, 1] f32.
    """
    B, F = x.shape
    assert F == IN_FEATURES

    # Batch tile: multiple of 8 (sublane), capped so double-buffered x tiles
    # fit comfortably in scoped VMEM on every chip (incl. v7x's 64 MiB).
    tb = min(block_b, _round_up(B, 8))
    bp = _round_up(B, tb)
    if bp != B:
        x = jnp.pad(x, ((0, bp - B), (0, 0)))

    w1_bf16 = w1.astype(jnp.bfloat16)           # cast once, VMEM-resident
    w2_row = jnp.transpose(w2).reshape(1, HIDDEN)
    b2_scalar = jnp.reshape(b2, (1, 1))

    out = pl.pallas_call(
        _discriminator_kernel,
        out_shape=jax.ShapeDtypeStruct((bp, OUT), jnp.float32),
        grid_spec=pltpu.PrefetchScalarGridSpec(
            num_scalar_prefetch=0,
            grid=(bp // tb,),
            in_specs=[
                pl.BlockSpec((tb, IN_FEATURES), lambda i: (i, 0)),       # x tile
                pl.BlockSpec((IN_FEATURES, HIDDEN), lambda i: (0, 0)),   # w1 (resident)
                pl.BlockSpec((1, HIDDEN), lambda i: (0, 0)),             # b1 (resident)
                pl.BlockSpec((1, HIDDEN), lambda i: (0, 0)),             # w2 row (resident)
                pl.BlockSpec(memory_space=pltpu.MemorySpace.SMEM),       # b2 scalar
            ],
            out_specs=pl.BlockSpec((tb, OUT), lambda i: (i, 0)),
        ),
        compiler_params=pltpu.CompilerParams(
            dimension_semantics=("parallel",)),
    )(x, w1_bf16, b1, w2_row, b2_scalar)

    return out[:B]


def init_params(key):
    """Deterministic PyTorch-style Linear init (uniform +-1/sqrt(fan_in))."""
    k1, k2, k3, k4 = jax.random.split(key, 4)
    bound1 = 1.0 / jnp.sqrt(IN_FEATURES)
    bound2 = 1.0 / jnp.sqrt(HIDDEN)
    # Stored as [in, out] (transposed relative to torch's [out, in]).
    w1 = jax.random.uniform(k1, (IN_FEATURES, HIDDEN), jnp.float32, -bound1, bound1)
    b1 = jax.random.uniform(k2, (1, HIDDEN), jnp.float32, -bound1, bound1)
    w2 = jax.random.uniform(k3, (HIDDEN, OUT), jnp.float32, -bound2, bound2)
    b2 = jax.random.uniform(k4, (1, OUT), jnp.float32, -bound2, bound2)
    return w1, b1, w2, b2


if __name__ == "__main__":
    key = jax.random.PRNGKey(0)
    kx, kp = jax.random.split(key)

    B = 8  # small demo batch (latency-bound; real workloads tile at TB<=512)
    x = jax.random.normal(kx, (B, IN_FEATURES), jnp.float32)
    w1, b1, w2, b2 = init_params(kp)

    out = jax.block_until_ready(discriminator_forward(x, w1, b1, w2, b2))

    # Pure-JAX reference with matching numerics (bf16 MXU inputs, f32 accum,
    # eval-mode dropout = identity).
    h_ref = jnp.dot(x.astype(jnp.bfloat16), w1.astype(jnp.bfloat16),
                    preferred_element_type=jnp.float32) + b1
    ref = jax.nn.sigmoid(h_ref @ w2 + b2)

    assert out.shape == (B, 1)
    assert bool(jnp.all(jnp.isfinite(out)))
    assert jnp.allclose(out, ref, atol=2e-3, rtol=2e-3), float(jnp.max(jnp.abs(out - ref)))

    print("KERNEL_OK")
</pallas_src>

<mosaic_0001>
module attributes {stable_mosaic.version = 11 : i64} {
  func.func @_discriminator_kernel(%arg0: i32, %arg1: memref<8x2048xf32, #tpu.memory_space<vmem>>, %arg2: memref<2048x128xbf16, #tpu.memory_space<vmem>>, %arg3: memref<1x128xf32, #tpu.memory_space<vmem>>, %arg4: memref<1x128xf32, #tpu.memory_space<vmem>>, %arg5: memref<1x1xf32, #tpu.memory_space<smem>>, %arg6: memref<8x1xf32, #tpu.memory_space<vmem>>) attributes {dimension_semantics = [#tpu.dimension_semantics<parallel>], iteration_bounds = array<i64: 1>, scalar_prefetch = 0 : i64, scratch_operands = 0 : i64, tpu.core_type = #tpu.core_type<tc>, window_params = [{transform_indices = @transform_0, window_bounds = array<i64: 8, 2048>}, {pipeline_mode = #tpu.pipeline_mode<synchronous>, transform_indices = @transform_1, window_bounds = array<i64: 2048, 128>}, {pipeline_mode = #tpu.pipeline_mode<synchronous>, transform_indices = @transform_2, window_bounds = array<i64: 1, 128>}, {pipeline_mode = #tpu.pipeline_mode<synchronous>, transform_indices = @transform_3, window_bounds = array<i64: 1, 128>}, {transform_indices = @transform_4, window_bounds = array<i64: 1, 1>}, {transform_indices = @transform_5, window_bounds = array<i64: 8, 1>}]} {
    %c0 = arith.constant 0 : index
    %c0_0 = arith.constant 0 : index
    %0 = vector.load %arg1[%c0, %c0_0] : memref<8x2048xf32, #tpu.memory_space<vmem>>, vector<8x2048xf32>
    %1 = arith.truncf %0 : vector<8x2048xf32> to vector<8x2048xbf16>
    %c0_1 = arith.constant 0 : index
    %c0_2 = arith.constant 0 : index
    %2 = vector.load %arg2[%c0_1, %c0_2] : memref<2048x128xbf16, #tpu.memory_space<vmem>>, vector<2048x128xbf16>
    %cst = arith.constant dense<0.000000e+00> : vector<8x128xf32>
    %3 = tpu.matmul %1, %2, %cst {dimension_numbers = #tpu.dot_dimension_numbers<[1], [0], [0], [1], [0, 0, 1, 1], [], []>} : vector<8x2048xbf16>, vector<2048x128xbf16>, vector<8x128xf32> -> vector<8x128xf32>
    %c0_3 = arith.constant 0 : index
    %c0_4 = arith.constant 0 : index
    %4 = vector.load %arg3[%c0_3, %c0_4] : memref<1x128xf32, #tpu.memory_space<vmem>>, vector<1x128xf32>
    %5 = vector.broadcast %4 : vector<1x128xf32> to vector<8x128xf32>
    %6 = arith.addf %3, %5 : vector<8x128xf32>
    %c0_5 = arith.constant 0 : index
    %c0_6 = arith.constant 0 : index
    %7 = vector.load %arg4[%c0_5, %c0_6] : memref<1x128xf32, #tpu.memory_space<vmem>>, vector<1x128xf32>
    %8 = vector.broadcast %7 : vector<1x128xf32> to vector<8x128xf32>
    %9 = arith.mulf %6, %8 : vector<8x128xf32>
    %cst_7 = arith.constant dense<0.000000e+00> : vector<8xf32>
    %10 = vector.multi_reduction <add>, %9, %cst_7 [1] : vector<8x128xf32> to vector<8xf32>
    %11 = vector.shape_cast %10 : vector<8xf32> to vector<8x1xf32>
    %c0_8 = arith.constant 0 : index
    %c0_9 = arith.constant 0 : index
    %12 = memref.load %arg5[%c0_8, %c0_9] : memref<1x1xf32, #tpu.memory_space<smem>>
    %13 = vector.broadcast %12 : f32 to vector<8x1xf32>
    %14 = arith.addf %11, %13 : vector<8x1xf32>
    %15 = arith.negf %14 : vector<8x1xf32>
    %16 = math.exp %15 : vector<8x1xf32>
    %cst_10 = arith.constant 1.000000e+00 : f32
    %17 = vector.broadcast %cst_10 : f32 to vector<8x1xf32>
    %18 = arith.addf %17, %16 : vector<8x1xf32>
    %19 = arith.divf %17, %18 : vector<8x1xf32>
    %c0_11 = arith.constant 0 : index
    %c0_12 = arith.constant 0 : index
    %20 = vector.load %arg6[%c0_11, %c0_12] : memref<8x1xf32, #tpu.memory_space<vmem>>, vector<8x1xf32>
    tpu.vector_store %arg6[%c0_11, %c0_12], %19 {strides = array<i32>} : memref<8x1xf32, #tpu.memory_space<vmem>>, vector<8x1xf32>,
    return
  }
  func.func @transform_0(%arg0: i32) -> (i32, i32) {
    %c0_i32 = arith.constant 0 : i32
    %c0_i32_0 = arith.constant 0 : i32
    return %arg0, %c0_i32 : i32, i32
  }
  func.func @transform_1(%arg0: i32) -> (i32, i32) {
    %c0_i32 = arith.constant 0 : i32
    %c0_i32_0 = arith.constant 0 : i32
    %c0_i32_1 = arith.constant 0 : i32
    return %c0_i32, %c0_i32_0 : i32, i32
  }
  func.func @transform_2(%arg0: i32) -> (i32, i32) {
    %c0_i32 = arith.constant 0 : i32
    %c0_i32_0 = arith.constant 0 : i32
    %c0_i32_1 = arith.constant 0 : i32
    return %c0_i32, %c0_i32_0 : i32, i32
  }
  func.func @transform_3(%arg0: i32) -> (i32, i32) {
    %c0_i32 = arith.constant 0 : i32
    %c0_i32_0 = arith.constant 0 : i32
    %c0_i32_1 = arith.constant 0 : i32
    return %c0_i32, %c0_i32_0 : i32, i32
  }
  func.func @transform_4(%arg0: i32) -> (i32, i32) {
    %c0_i32 = arith.constant 0 : i32
    %c0_i32_0 = arith.constant 0 : i32
    %c0_i32_1 = arith.constant 0 : i32
    return %c0_i32, %c0_i32_0 : i32, i32
  }
  func.func @transform_5(%arg0: i32) -> (i32, i32) {
    %c0_i32 = arith.constant 0 : i32
    %c0_i32_0 = arith.constant 0 : i32
    return %arg0, %c0_i32 : i32, i32
  }
}

</mosaic_0001>

<bundles_post_ra>
// kernel: tpu_custom_call.1
= control target key start
LH: loop header
LB: loop body
LE: loop exit
PB: predicated region body
PF: predicated region fallthrough
CT: control target
= control target key end

     0   :  { %11 = vsyncpa [#allocation4], 0  ;;  %s2026_s0 = inlined_call_operand.hbm [shape: f32[8,2048], index: 0, kind: input, shape index: {}]   ;;  %s2027_s1 = inlined_call_operand.hbm [shape: bf16[2048,128], index: 1, kind: input, shape index: {}]   ;;  %s2028_s2 = inlined_call_operand.vmem [shape: f32[1,128], index: 2, kind: input, shape index: {}]   ;;  %s2029_s3 = inlined_call_operand.vmem [shape: f32[1,128], index: 3, kind: input, shape index: {}]   ;;  %s2030_s4 = inlined_call_operand.<no memory space> [shape: f32[1,1], index: 4, kind: input, shape index: {}]   ;;  %s2031_s5 = inlined_call_operand.vmem [shape: f32[8,1], index: 5, kind: output, shape index: {}]  }
   0x1   :  { %12 = vsyncpa [#allocation6], 0  ;;  %s1949_s18 = smov [#allocation3]   ;;  %s1950_s20 = smov [#allocation5]  }
   0x2   :  { %s19_s19 = sshll.u32 %s1949_s18, 4  ;;  %s28_s21 = sshll.u32 %s1950_s20, 4  ;;  %s20_s19 = int_to_ptr.vmem [resolvable:$true] %s19_s19  ;;  %s1983_s21 = int_to_ptr.vmem [resolvable:$true] %s28_s21 }
   0x3   :  { %s1901_s24 = scalar_lea.hbm %s2026_s0, 2048 }
   0x4   :  { %p1902_p0 = scmp.ne.s32.totalorder %s2026_s0, %s1901_s24  ;;  %p1905_p1 = scmp.lt.u32.totalorder %s1901_s24, %s2026_s0 }
   0x6   :  { %p1907_p2 = pnand %p1905_p1, %p1902_p0 }
   0x8   :  { %1910 = shalt.err (!%p1907_p2)
}
   0x9   :  { %s1911_s29 = scalar_lea.vmem %s20_s19, 2048  ;;  %p1916_p4 = scmp.lt.s32.totalorder %s20_s19, %s20_s19 }
   0xa   :  { %p1912_p3 = scmp.ne.s32.totalorder %s20_s19, %s1911_s29  ;;  %p1917_p5 = scmp.lt.s32.totalorder %s1911_s29, %s1911_s29 }
   0xc   :  { %p1918_p6 = por %p1917_p5, %p1916_p4 }
   0xe   :  { %p1919_p7 = pnand %p1918_p6, %p1912_p3 }
  0x10   :  { %1922 = shalt.err (!%p1919_p7)
}
  0x11   :  { %22 = dma.hbm_to_vmem [thread:$0]  %s2026_s0, 2048, %s20_s19, [#allocation4]  }
  0x12   :  { %s1923_s9 = scalar_lea.hbm %s2027_s1, 16384 }
  0x13   :  { %p1924_p8 = scmp.ne.s32.totalorder %s2027_s1, %s1923_s9  ;;  %p1927_p9 = scmp.lt.u32.totalorder %s1923_s9, %s2027_s1 }
  0x15   :  { %p1929_p10 = pnand %p1927_p9, %p1924_p8 }
  0x17   :  { %1932 = shalt.err (!%p1929_p10)
}
  0x18   :  { %s1933_s14 = scalar_lea.vmem %s1983_s21, 16384  ;;  %p1938_p12 = scmp.lt.s32.totalorder %s1983_s21, %s1983_s21 }
  0x19   :  { %p1934_p11 = scmp.ne.s32.totalorder %s1983_s21, %s1933_s14  ;;  %p1939_p13 = scmp.lt.s32.totalorder %s1933_s14, %s1933_s14 }
  0x1b   :  { %p1940_p0 = por %p1939_p13, %p1938_p12 }
  0x1d   :  { %p1941_p1 = pnand %p1940_p0, %p1934_p11 }
  0x1f   :  { %1944 = shalt.err (!%p1941_p1)
}
  0x20   :  { %s1951_s0 = smov 64   ;;  %s1952_s15 = smov 4  }
  0x21   :  { %34 = dma.hbm_to_vmem [thread:$0]  %s2027_s1, 16384, %s1983_s21, [#allocation6], %s1951_s0, %s1951_s0, %s1952_s15  }
  0x22   :  { %1945 = dma.done.wait [#allocation4], 2048  }
  0x23   :  { %1946 = vsyncadd [#allocation4], 4294965248 }
  0x24   :  { %1947 = dma.done.wait [#allocation6], 16384  }
  0x25   :  { %1948 = vsyncadd [#allocation6], 4294950912  ;;  %v1769_v0 = vld [vmem:[#allocation5 + $0x40] sm:$0xff]   ;;  %v1773_v4 = vld [vmem:[#allocation5 + $0x48] sm:$0xff]   ;;  %vm1450_vm0 = vcmask 7168  }
  0x26   :  { %v1770_v1 = vld [vmem:[#allocation5 + $0xc0] sm:$0xff]   ;;  %1589 = vmatprep.subr.bf16.mxu0 %v1769_v0  ;;  %v1774_v5 = vld [vmem:[#allocation5 + $0xc8] sm:$0xff]   ;;  %v1777_v8 = vld [vmem:[#allocation5 + $0x50] sm:$0xff]  }
  0x27   :  { %v1771_v2 = vld [vmem:[#allocation5] sm:$0xff]   ;;  %1611 = vmatprep.subr.bf16.mxu1 %v1770_v1  ;;  %v1775_v6 = vld [vmem:[#allocation5 + $0x8] sm:$0xff]   ;;  %v1778_v9 = vld [vmem:[#allocation5 + $0xd0] sm:$0xff]  }
  0x28   :  { %v1772_v3 = vld [vmem:[#allocation5 + $0x80] sm:$0xff]   ;;  %1590 = vmatpush3.bf16.msra.mxu0 %v1771_v2  ;;  %v1776_v7 = vld [vmem:[#allocation5 + $0x88] sm:$0xff]   ;;  %v1779_v10 = vld [vmem:[#allocation5 + $0x10] sm:$0xff]  }
  0x29   :  { %1612 = vmatpush3.bf16.msra.mxu1 %v1772_v3  ;;  %1591 = vmatprep.subr.bf16.mxu0 %v1773_v4  ;;  %v1780_v11 = vld [vmem:[#allocation5 + $0x90] sm:$0xff]   ;;  %v1781_v12 = vld [vmem:[#allocation5 + $0x58] sm:$0xff]   ;;  %v1785_v16 = vld [vmem:[#allocation5 + $0x60] sm:$0xff]  }
  0x2a   :  { %1613 = vmatprep.subr.bf16.mxu1 %v1774_v5  ;;  %v1782_v13 = vld [vmem:[#allocation5 + $0xd8] sm:$0xff]   ;;  %v1786_v17 = vld [vmem:[#allocation5 + $0xe0] sm:$0xff]   ;;  %v1789_v20 = vld [vmem:[#allocation5 + $0x68] sm:$0xff]  }
  0x2b   :  { %v1783_v14 = vld [vmem:[#allocation5 + $0x18] sm:$0xff]   ;;  %v1787_v18 = vld [vmem:[#allocation5 + $0x20] sm:$0xff]   ;;  %v1790_v21 = vld [vmem:[#allocation5 + $0xe8] sm:$0xff]  }
  0x2c   :  { %1592 = vmatpush3.bf16.msra.mxu0 %v1775_v6  ;;  %v1784_v15 = vld [vmem:[#allocation5 + $0x98] sm:$0xff]   ;;  %v1788_v19 = vld [vmem:[#allocation5 + $0xa0] sm:$0xff]   ;;  %v1791_v22 = vld [vmem:[#allocation5 + $0x28] sm:$0xff]  }
  0x2d   :  { %1614 = vmatpush3.bf16.msra.mxu1 %v1776_v7  ;;  %1593 = vmatprep.subr.bf16.mxu0 %v1777_v8  ;;  %v1792_v23 = vld [vmem:[#allocation5 + $0xa8] sm:$0xff]   ;;  %v1793_v24 = vld [vmem:[#allocation5 + $0x70] sm:$0xff]   ;;  %v1797_v28 = vld [vmem:[#allocation5 + $0x78] sm:$0xff]  }
  0x2e   :  { %1615 = vmatprep.subr.bf16.mxu1 %v1778_v9  ;;  %v1794_v25 = vld [vmem:[#allocation5 + $0xf0] sm:$0xff]   ;;  %v1798_v29 = vld [vmem:[#allocation5 + $0xf8] sm:$0xff]   ;;  %v49_v32 = vld [vmem:[#allocation3 + $0x8] sm:$0xff] }
  0x2f   :  { %v1795_v26 = vld [vmem:[#allocation5 + $0x30] sm:$0xff]   ;;  %v1799_v30 = vld [vmem:[#allocation5 + $0x38] sm:$0xff]   ;;  %v48_v34 = vld [vmem:[#allocation3] sm:$0xff]  ;;  %v65_v35 = vpack.c.bf16 %v49_v32, %v49_v32 }
  0x30   :  { %1594 = vmatpush3.bf16.msra.mxu0 %v1779_v10  ;;  %v1796_v27 = vld [vmem:[#allocation5 + $0xb0] sm:$0xff]   ;;  %v1800_v31 = vld [vmem:[#allocation5 + $0xb8] sm:$0xff]   ;;  %v64_v37 = vpack.c.bf16 %v48_v34, %v48_v34  ;;  %v1801_v40 = vld [vmem:[#allocation5 + $0x140] sm:$0xff]  }
  0x31   :  { %1616 = vmatpush3.bf16.msra.mxu1 %v1780_v11  ;;  %1595 = vmatprep.subr.bf16.mxu0 %v1781_v12  ;;  %v51_v33 = vld [vmem:[#allocation3 + $0x18] sm:$0xff]  ;;  %v50_v38 = vld [vmem:[#allocation3 + $0x10] sm:$0xff]  ;;  %v1802_v41 = vld [vmem:[#allocation5 + $0x1c0] sm:$0xff]  }
  0x32   :  { %1617 = vmatprep.subr.bf16.mxu1 %v1782_v13  ;;  %v67_v36 = vpack.c.bf16 %v51_v33, %v51_v33  ;;  %v66_v39 = vpack.c.bf16 %v50_v38, %v50_v38  ;;  %1143 = vmatprep.mubr.bf16.mxu0 %v65_v35  ;;  %v1803_v42 = vld [vmem:[#allocation5 + $0x100] sm:$0xff]   ;;  %v1805_v44 = vld [vmem:[#allocation5 + $0x148] sm:$0xff]   ;;  %v1809_v48 = vld [vmem:[#allocation5 + $0x150] sm:$0xff]  }
  0x33   :  { %v1804_v43 = vld [vmem:[#allocation5 + $0x180] sm:$0xff]   ;;  %v1806_v45 = vld [vmem:[#allocation5 + $0x1c8] sm:$0xff]   ;;  %v1810_v49 = vld [vmem:[#allocation5 + $0x1d0] sm:$0xff]  }
  0x34   :  { %1596 = vmatpush3.bf16.msra.mxu0 %v1783_v14  ;;  %1183 = vmatprep.mubr.bf16.mxu1 %v67_v36  ;;  %v1807_v46 = vld [vmem:[#allocation5 + $0x108] sm:$0xff]   ;;  %v1811_v50 = vld [vmem:[#allocation5 + $0x110] sm:$0xff]   ;;  %v1813_v52 = vld [vmem:[#allocation5 + $0x158] sm:$0xff]  }
  0x35   :  { %1618 = vmatpush3.bf16.msra.mxu1 %v1784_v15  ;;  %1597 = vmatprep.subr.bf16.mxu0 %v1785_v16  ;;  %v1808_v47 = vld [vmem:[#allocation5 + $0x188] sm:$0xff]   ;;  %v1812_v51 = vld [vmem:[#allocation5 + $0x190] sm:$0xff]   ;;  %v1814_v53 = vld [vmem:[#allocation5 + $0x1d8] sm:$0xff]  }
  0x36   :  { %1619 = vmatprep.subr.bf16.mxu1 %v1786_v17  ;;  %v1815_v54 = vld [vmem:[#allocation5 + $0x118] sm:$0xff]   ;;  %v1817_v56 = vld [vmem:[#allocation5 + $0x160] sm:$0xff]   ;;  %v1821_v60 = vld [vmem:[#allocation5 + $0x168] sm:$0xff]  }
  0x37   :  { %v1816_v55 = vld [vmem:[#allocation5 + $0x198] sm:$0xff]   ;;  %v1818_v57 = vld [vmem:[#allocation5 + $0x1e0] sm:$0xff]   ;;  %v1822_v61 = vld [vmem:[#allocation5 + $0x1e8] sm:$0xff]  }
  0x38   :  { %1598 = vmatpush3.bf16.msra.mxu0 %v1787_v18  ;;  %v1819_v58 = vld [vmem:[#allocation5 + $0x120] sm:$0xff]   ;;  %v1823_v62 = vld [vmem:[#allocation5 + $0x128] sm:$0xff]   ;;  %v1825_v0 = vld [vmem:[#allocation5 + $0x170] sm:$0xff]  }
  0x39   :  { %1620 = vmatpush3.bf16.msra.mxu1 %v1788_v19  ;;  %1599 = vmatprep.subr.bf16.mxu0 %v1789_v20  ;;  %v1820_v59 = vld [vmem:[#allocation5 + $0x1a0] sm:$0xff]   ;;  %v1824_v63 = vld [vmem:[#allocation5 + $0x1a8] sm:$0xff]   ;;  %v1826_v1 = vld [vmem:[#allocation5 + $0x1f0] sm:$0xff]  }
  0x3a   :  { %1621 = vmatprep.subr.bf16.mxu1 %v1790_v21  ;;  %v1827_v2 = vld [vmem:[#allocation5 + $0x130] sm:$0xff]   ;;  %v1829_v4 = vld [vmem:[#allocation5 + $0x178] sm:$0xff]   ;;  %v53_v8 = vld [vmem:[#allocation3 + $0x28] sm:$0xff] }
  0x3b   :  { %v1828_v3 = vld [vmem:[#allocation5 + $0x1b0] sm:$0xff]   ;;  %v1830_v5 = vld [vmem:[#allocation5 + $0x1f8] sm:$0xff]   ;;  %v69_v10 = vpack.c.bf16 %v53_v8, %v53_v8  ;;  %v52_v12 = vld [vmem:[#allocation3 + $0x20] sm:$0xff] }
  0x3c   :  { %1600 = vmatpush3.bf16.msra.mxu0 %v1791_v22  ;;  %v1831_v6 = vld [vmem:[#allocation5 + $0x138] sm:$0xff]   ;;  %v54_v13 = vld [vmem:[#allocation3 + $0x30] sm:$0xff]  ;;  %v68_v14 = vpack.c.bf16 %v52_v12, %v52_v12  ;;  %v1833_v16 = vld [vmem:[#allocation5 + $0x240] sm:$0xff]  }
  0x3d   :  { %1622 = vmatpush3.bf16.msra.mxu1 %v1792_v23  ;;  %1601 = vmatprep.subr.bf16.mxu0 %v1793_v24  ;;  %v1832_v7 = vld [vmem:[#allocation5 + $0x1b8] sm:$0xff]   ;;  %v70_v15 = vpack.c.bf16 %v54_v13, %v54_v13  ;;  %v1834_v17 = vld [vmem:[#allocation5 + $0x2c0] sm:$0xff]   ;;  %v1837_v20 = vld [vmem:[#allocation5 + $0x248] sm:$0xff]  }
  0x3e   :  { %1623 = vmatprep.subr.bf16.mxu1 %v1794_v25  ;;  %v55_v9 = vld [vmem:[#allocation3 + $0x38] sm:$0xff]  ;;  %v1835_v18 = vld [vmem:[#allocation5 + $0x200] sm:$0xff]   ;;  %v1838_v21 = vld [vmem:[#allocation5 + $0x2c8] sm:$0xff]  }
  0x3f   :  { %v71_v11 = vpack.c.bf16 %v55_v9, %v55_v9  ;;  %v1836_v19 = vld [vmem:[#allocation5 + $0x280] sm:$0xff]   ;;  %v1839_v22 = vld [vmem:[#allocation5 + $0x208] sm:$0xff]   ;;  %v1841_v24 = vld [vmem:[#allocation5 + $0x250] sm:$0xff]  }
  0x40   :  { %1602 = vmatpush3.bf16.msra.mxu0 %v1795_v26  ;;  %v1840_v23 = vld [vmem:[#allocation5 + $0x288] sm:$0xff]   ;;  %v1842_v25 = vld [vmem:[#allocation5 + $0x2d0] sm:$0xff]   ;;  %v1849_v32 = vld [vmem:[#allocation5 + $0x260] sm:$0xff]  }
  0x41   :  { %1624 = vmatpush3.bf16.msra.mxu1 %v1796_v27  ;;  %1603 = vmatprep.subr.bf16.mxu0 %v1797_v28  ;;  %v1843_v26 = vld [vmem:[#allocation5 + $0x210] sm:$0xff]   ;;  %v1845_v28 = vld [vmem:[#allocation5 + $0x258] sm:$0xff]   ;;  %v1850_v33 = vld [vmem:[#allocation5 + $0x2e0] sm:$0xff]  }
  0x42   :  { %1625 = vmatprep.subr.bf16.mxu1 %v1798_v29  ;;  %v1844_v27 = vld [vmem:[#allocation5 + $0x290] sm:$0xff]   ;;  %v1846_v29 = vld [vmem:[#allocation5 + $0x2d8] sm:$0xff]   ;;  %v1851_v34 = vld [vmem:[#allocation5 + $0x220] sm:$0xff]  }
  0x43   :  { %v1852_v35 = vld [vmem:[#allocation5 + $0x2a0] sm:$0xff]   ;;  %v1853_v36 = vld [vmem:[#allocation5 + $0x268] sm:$0xff]  }
  0x44   :  { %1604 = vmatpush3.bf16.msra.mxu0 %v1799_v30  ;;  %v1847_v30 = vld [vmem:[#allocation5 + $0x218] sm:$0xff]   ;;  %v1855_v38 = vld [vmem:[#allocation5 + $0x228] sm:$0xff]   ;;  %v1881_v8 = vld [vmem:[#allocation5 + $0x360] sm:$0xff]  }
  0x45   :  { %1626 = vmatpush3.bf16.msra.mxu1 %v1800_v31  ;;  %1633 = vmatprep.subr.bf16.mxu0 %v1801_v40  ;;  %v1848_v31 = vld [vmem:[#allocation5 + $0x298] sm:$0xff]   ;;  %v1857_v40 = vld [vmem:[#allocation5 + $0x270] sm:$0xff]   ;;  %v1882_v9 = vld [vmem:[#allocation5 + $0x3e0] sm:$0xff]  }
  0x46   :  { %1655 = vmatprep.subr.bf16.mxu1 %v1802_v41  ;;  %v1858_v41 = vld [vmem:[#allocation5 + $0x2f0] sm:$0xff]   ;;  %v1885_v12 = vld [vmem:[#allocation5 + $0x368] sm:$0xff]  }
  0x47   :  { %1144 = vmatmul.mubr.bf16.vlgmr.msra.gmra.mrb[0].mxu0 %v64_v37  ;;  %v1854_v37 = vld [vmem:[#allocation5 + $0x2e8] sm:$0xff]  }
  0x48   :  { %1184 = vmatmul.mubr.bf16.vlgmr.msra.gmra.mrb[0].mxu1 %v66_v39  ;;  %1634 = vmatpush3.bf16.msra.mxu0 %v1803_v42  ;;  %v1856_v39 = vld [vmem:[#allocation5 + $0x2a8] sm:$0xff]   ;;  %v1859_v42 = vld [vmem:[#allocation5 + $0x230] sm:$0xff]  }
  0x49   :  { %1656 = vmatpush3.bf16.msra.mxu1 %v1804_v43  ;;  %1635 = vmatprep.subr.bf16.mxu0 %v1805_v44  ;;  %v1860_v43 = vld [vmem:[#allocation5 + $0x2b0] sm:$0xff]   ;;  %v1861_v44 = vld [vmem:[#allocation5 + $0x278] sm:$0xff]   ;;  %v1886_v13 = vld [vmem:[#allocation5 + $0x3e8] sm:$0xff]  }
  0x4a   :  { %1657 = vmatprep.subr.bf16.mxu1 %v1806_v45  ;;  %1223 = vmatprep.mubr.bf16.mxu0 %v69_v10  ;;  %v1862_v45 = vld [vmem:[#allocation5 + $0x2f8] sm:$0xff]   ;;  %v1883_v10 = vld [vmem:[#allocation5 + $0x320] sm:$0xff]  }
  0x4b   :  { %1263 = vmatprep.mubr.bf16.mxu1 %v71_v11  ;;  %v1884_v11 = vld [vmem:[#allocation5 + $0x3a0] sm:$0xff]  }
  0x4c   :  { %1636 = vmatpush3.bf16.msra.mxu0 %v1807_v46  ;;  %v1863_v46 = vld [vmem:[#allocation5 + $0x238] sm:$0xff]  }
  0x4d   :  { %1658 = vmatpush3.bf16.msra.mxu1 %v1808_v47  ;;  %1637 = vmatprep.subr.bf16.mxu0 %v1809_v48  ;;  %v1864_v47 = vld [vmem:[#allocation5 + $0x2b8] sm:$0xff]   ;;  %v57_v48 = vld [vmem:[#allocation3 + $0x48] sm:$0xff] }
  0x4e   :  { %1659 = vmatprep.subr.bf16.mxu1 %v1810_v49  ;;  %v73_v49 = vpack.c.bf16 %v57_v48, %v57_v48 }
  0x50   :  { %1638 = vmatpush3.bf16.msra.mxu0 %v1811_v50  ;;  %v59_v50 = vld [vmem:[#allocation3 + $0x58] sm:$0xff] }
  0x51   :  { %1660 = vmatpush3.bf16.msra.mxu1 %v1812_v51  ;;  %1639 = vmatprep.subr.bf16.mxu0 %v1813_v52  ;;  %v56_v51 = vld [vmem:[#allocation3 + $0x40] sm:$0xff]  ;;  %v58_v52 = vld [vmem:[#allocation3 + $0x50] sm:$0xff] }
  0x52   :  { %1661 = vmatprep.subr.bf16.mxu1 %v1814_v53  ;;  %v75_v53 = vpack.c.bf16 %v59_v50, %v59_v50 }
  0x54   :  { %1640 = vmatpush3.bf16.msra.mxu0 %v1815_v54  ;;  %v72_v54 = vpack.c.bf16 %v56_v51, %v56_v51 }
  0x55   :  { %1662 = vmatpush3.bf16.msra.mxu1 %v1816_v55  ;;  %1641 = vmatprep.subr.bf16.mxu0 %v1817_v56  ;;  %v74_v55 = vpack.c.bf16 %v58_v52, %v58_v52  ;;  %v1865_v56 = vld [vmem:[#allocation5 + $0x340] sm:$0xff]  }
  0x56   :  { %1663 = vmatprep.subr.bf16.mxu1 %v1818_v57  ;;  %v1866_v57 = vld [vmem:[#allocation5 + $0x3c0] sm:$0xff]  }
  0x58   :  { %1642 = vmatpush3.bf16.msra.mxu0 %v1819_v58  ;;  %v1867_v58 = vld [vmem:[#allocation5 + $0x300] sm:$0xff]  }
  0x59   :  { %1664 = vmatpush3.bf16.msra.mxu1 %v1820_v59  ;;  %1643 = vmatprep.subr.bf16.mxu0 %v1821_v60  ;;  %v1868_v59 = vld [vmem:[#allocation5 + $0x380] sm:$0xff]   ;;  %v1869_v60 = vld [vmem:[#allocation5 + $0x348] sm:$0xff]  }
  0x5a   :  { %1665 = vmatprep.subr.bf16.mxu1 %v1822_v61  ;;  %v1870_v61 = vld [vmem:[#allocation5 + $0x3c8] sm:$0xff]  }
  0x5c   :  { %1644 = vmatpush3.bf16.msra.mxu0 %v1823_v62  ;;  %v1871_v62 = vld [vmem:[#allocation5 + $0x308] sm:$0xff]  }
  0x5d   :  { %1666 = vmatpush3.bf16.msra.mxu1 %v1824_v63  ;;  %1645 = vmatprep.subr.bf16.mxu0 %v1825_v0  ;;  %v1872_v63 = vld [vmem:[#allocation5 + $0x388] sm:$0xff]   ;;  %v1873_v0 = vld [vmem:[#allocation5 + $0x350] sm:$0xff]  }
  0x5e   :  { %1667 = vmatprep.subr.bf16.mxu1 %v1826_v1  ;;  %v1874_v1 = vld [vmem:[#allocation5 + $0x3d0] sm:$0xff]  }
  0x60   :  { %1646 = vmatpush3.bf16.msra.mxu0 %v1827_v2  ;;  %v1875_v2 = vld [vmem:[#allocation5 + $0x310] sm:$0xff]  }
  0x61   :  { %1668 = vmatpush3.bf16.msra.mxu1 %v1828_v3  ;;  %1647 = vmatprep.subr.bf16.mxu0 %v1829_v4  ;;  %v1876_v3 = vld [vmem:[#allocation5 + $0x390] sm:$0xff]   ;;  %v1877_v4 = vld [vmem:[#allocation5 + $0x358] sm:$0xff]  }
  0x62   :  { %1669 = vmatprep.subr.bf16.mxu1 %v1830_v5  ;;  %v1878_v5 = vld [vmem:[#allocation5 + $0x3d8] sm:$0xff]  }
  0x64   :  { %1648 = vmatpush3.bf16.msra.mxu0 %v1831_v6  ;;  %v1879_v6 = vld [vmem:[#allocation5 + $0x318] sm:$0xff]  }
  0x65   :  { %1670 = vmatpush3.bf16.msra.mxu1 %v1832_v7  ;;  %1677 = vmatprep.subr.bf16.mxu0 %v1833_v16  ;;  %v1880_v7 = vld [vmem:[#allocation5 + $0x398] sm:$0xff]   ;;  %v1889_v16 = vld [vmem:[#allocation5 + $0x370] sm:$0xff]  }
  0x66   :  { %1699 = vmatprep.subr.bf16.mxu1 %v1834_v17  ;;  %v1890_v17 = vld [vmem:[#allocation5 + $0x3f0] sm:$0xff]  }
  0x67   :  { %1224 = vmatmul.mubr.bf16.vlgmr.msra.gmra.mrb[4].mxu0 %v68_v14  ;;  %v1887_v14 = vld [vmem:[#allocation5 + $0x328] sm:$0xff]  }
  0x68   :  { %1264 = vmatmul.mubr.bf16.vlgmr.msra.gmra.mrb[4].mxu1 %v70_v15  ;;  %1678 = vmatpush3.bf16.msra.mxu0 %v1835_v18  ;;  %v1888_v15 = vld [vmem:[#allocation5 + $0x3a8] sm:$0xff]   ;;  %v1891_v18 = vld [vmem:[#allocation5 + $0x330] sm:$0xff]  }
  0x69   :  { %1700 = vmatpush3.bf16.msra.mxu1 %v1836_v19  ;;  %1679 = vmatprep.subr.bf16.mxu0 %v1837_v20  ;;  %v1892_v19 = vld [vmem:[#allocation5 + $0x3b0] sm:$0xff]   ;;  %v1893_v20 = vld [vmem:[#allocation5 + $0x378] sm:$0xff]  }
  0x6a   :  { %1701 = vmatprep.subr.bf16.mxu1 %v1838_v21  ;;  %1303 = vmatprep.mubr.bf16.mxu0 %v73_v49  ;;  %v1894_v21 = vld [vmem:[#allocation5 + $0x3f8] sm:$0xff]  }
  0x6b   :  { %1343 = vmatprep.mubr.bf16.mxu1 %v75_v53 }
  0x6c   :  { %1680 = vmatpush3.bf16.msra.mxu0 %v1839_v22  ;;  %v1895_v22 = vld [vmem:[#allocation5 + $0x338] sm:$0xff]  }
  0x6d   :  { %1702 = vmatpush3.bf16.msra.mxu1 %v1840_v23  ;;  %1681 = vmatprep.subr.bf16.mxu0 %v1841_v24  ;;  %v1896_v23 = vld [vmem:[#allocation5 + $0x3b8] sm:$0xff]   ;;  %v61_v24 = vld [vmem:[#allocation3 + $0x68] sm:$0xff] }
  0x6e   :  { %1703 = vmatprep.subr.bf16.mxu1 %v1842_v25  ;;  %v63_v25 = vld [vmem:[#allocation3 + $0x78] sm:$0xff] }
  0x70   :  { %1682 = vmatpush3.bf16.msra.mxu0 %v1843_v26  ;;  %v60_v26 = vld [vmem:[#allocation3 + $0x60] sm:$0xff] }
  0x71   :  { %1704 = vmatpush3.bf16.msra.mxu1 %v1844_v27  ;;  %1683 = vmatprep.subr.bf16.mxu0 %v1845_v28  ;;  %v77_v27 = vpack.c.bf16 %v61_v24, %v61_v24  ;;  %v79_v28 = vpack.c.bf16 %v63_v25, %v63_v25 }
  0x72   :  { %1705 = vmatprep.subr.bf16.mxu1 %v1846_v29  ;;  %v76_v29 = vpack.c.bf16 %v60_v26, %v60_v26 }
  0x74   :  { %1684 = vmatpush3.bf16.msra.mxu0 %v1847_v30  ;;  %v62_v30 = vld [vmem:[#allocation3 + $0x70] sm:$0xff] }
  0x75   :  { %1706 = vmatpush3.bf16.msra.mxu1 %v1848_v31  ;;  %1685 = vmatprep.subr.bf16.mxu0 %v1849_v32  ;;  %v78_v31 = vpack.c.bf16 %v62_v30, %v62_v30 }
  0x76   :  { %1707 = vmatprep.subr.bf16.mxu1 %v1850_v33 }
  0x78   :  { %1686 = vmatpush3.bf16.msra.mxu0 %v1851_v34  ;;  %v1458_v34 = vld [vmem:[%s2028_s2] ss:$0 sm:$0xff] }
  0x79   :  { %1708 = vmatpush3.bf16.msra.mxu1 %v1852_v35  ;;  %1687 = vmatprep.subr.bf16.mxu0 %v1853_v36 }
  0x7a   :  { %1709 = vmatprep.subr.bf16.mxu1 %v1854_v37 }
  0x7c   :  { %1688 = vmatpush3.bf16.msra.mxu0 %v1855_v38 }
  0x7d   :  { %1710 = vmatpush3.bf16.msra.mxu1 %v1856_v39  ;;  %1689 = vmatprep.subr.bf16.mxu0 %v1857_v40 }
  0x7e   :  { %1711 = vmatprep.subr.bf16.mxu1 %v1858_v41 }
  0x80   :  { %1690 = vmatpush3.bf16.msra.mxu0 %v1859_v42 }
  0x81   :  { %1712 = vmatpush3.bf16.msra.mxu1 %v1860_v43  ;;  %1691 = vmatprep.subr.bf16.mxu0 %v1861_v44 }
  0x82   :  { %1713 = vmatprep.subr.bf16.mxu1 %v1862_v45 }
  0x84   :  { %1692 = vmatpush3.bf16.msra.mxu0 %v1863_v46 }
  0x85   :  { %1714 = vmatpush3.bf16.msra.mxu1 %v1864_v47  ;;  %1721 = vmatprep.subr.bf16.mxu0 %v1865_v56 }
  0x86   :  { %1743 = vmatprep.subr.bf16.mxu1 %v1866_v57 }
  0x87   :  { %1304 = vmatmul.mubr.bf16.vlgmr.msra.gmra.mrb[8].mxu0 %v72_v54 }
  0x88   :  { %1344 = vmatmul.mubr.bf16.vlgmr.msra.gmra.mrb[8].mxu1 %v74_v55  ;;  %1722 = vmatpush3.bf16.msra.mxu0 %v1867_v58 }
  0x89   :  { %1744 = vmatpush3.bf16.msra.mxu1 %v1868_v59  ;;  %1723 = vmatprep.subr.bf16.mxu0 %v1869_v60 }
  0x8a   :  { %1745 = vmatprep.subr.bf16.mxu1 %v1870_v61  ;;  %1383 = vmatprep.mubr.bf16.mxu0 %v77_v27 }
  0x8b   :  { %1423 = vmatprep.mubr.bf16.mxu1 %v79_v28 }
  0x8c   :  { %1724 = vmatpush3.bf16.msra.mxu0 %v1871_v62 }
  0x8d   :  { %1746 = vmatpush3.bf16.msra.mxu1 %v1872_v63  ;;  %1725 = vmatprep.subr.bf16.mxu0 %v1873_v0 }
  0x8e   :  { %1747 = vmatprep.subr.bf16.mxu1 %v1874_v1 }
  0x90   :  { %1726 = vmatpush3.bf16.msra.mxu0 %v1875_v2 }
  0x91   :  { %1748 = vmatpush3.bf16.msra.mxu1 %v1876_v3  ;;  %1727 = vmatprep.subr.bf16.mxu0 %v1877_v4 }
  0x92   :  { %1749 = vmatprep.subr.bf16.mxu1 %v1878_v5 }
  0x94   :  { %1728 = vmatpush3.bf16.msra.mxu0 %v1879_v6 }
  0x95   :  { %1750 = vmatpush3.bf16.msra.mxu1 %v1880_v7  ;;  %1729 = vmatprep.subr.bf16.mxu0 %v1881_v8 }
  0x96   :  { %1751 = vmatprep.subr.bf16.mxu1 %v1882_v9 }
  0x98   :  { %1730 = vmatpush3.bf16.msra.mxu0 %v1883_v10 }
  0x99   :  { %1752 = vmatpush3.bf16.msra.mxu1 %v1884_v11  ;;  %1731 = vmatprep.subr.bf16.mxu0 %v1885_v12 }
  0x9a   :  { %1753 = vmatprep.subr.bf16.mxu1 %v1886_v13 }
  0x9c   :  { %1732 = vmatpush3.bf16.msra.mxu0 %v1887_v14 }
  0x9d   :  { %1754 = vmatpush3.bf16.msra.mxu1 %v1888_v15  ;;  %1733 = vmatprep.subr.bf16.mxu0 %v1889_v16  ;;  %v1587_v16 = vld [vmem:[%s2029_s3] ss:$0 sm:$0xff] }
  0x9e   :  { %1755 = vmatprep.subr.bf16.mxu1 %v1890_v17 }
  0xa0   :  { %1734 = vmatpush3.bf16.msra.mxu0 %v1891_v18 }
  0xa1   :  { %1756 = vmatpush3.bf16.msra.mxu1 %v1892_v19  ;;  %1735 = vmatprep.subr.bf16.mxu0 %v1893_v20  ;;  %v1442_v19 = vstv %s2030_s4 }
  0xa2   :  { %1757 = vmatprep.subr.bf16.mxu1 %v1894_v21 }
  0xa4   :  { %1736 = vmatpush3.bf16.msra.mxu0 %v1895_v22 }
  0xa5   :  { %1758 = vmatpush3.bf16.msra.mxu1 %v1896_v23 }
  0xa7   :  { %1384 = vmatmul.mubr.bf16.vlgmr.msra.gmra.mrb[12].mxu0 %v76_v29 }
  0xa8   :  { %1424 = vmatmul.mubr.bf16.vlgmr.msra.gmra.mrb[12].mxu1 %v78_v31 }
 0x11a   :  { %v1605_v32 = vpop.f32.mrb[0].mxu0 }
 0x11b   :  { %v1627_v33 = vpop.f32.mrb[0].mxu1  ;;  %v1606_v35 = vpop.f32.mrb[1].mxu0 }
 0x11c   :  { %v1628_v36 = vpop.f32.mrb[1].mxu1  ;;  %v1607_v37 = vadd.f32 %v1606_v35, %v1605_v32  ;;  %v1608_v39 = vpop.f32.mrb[2].mxu0 }
 0x11d   :  { %v1629_v38 = vadd.f32 %v1628_v36, %v1627_v33  ;;  %v1630_v40 = vpop.f32.mrb[2].mxu1  ;;  %v1609_v41 = vpop.f32.mrb[3].mxu0 }
 0x11e   :  { %v1631_v42 = vpop.f32.mrb[3].mxu1  ;;  %v1146_v43 = vadd.f32 %v1607_v37, %v1458_v34 }
 0x120   :  { %v1186_v44 = vadd.f32 %v1629_v38, %v1146_v43 }
 0x13a   :  { %v1649_v45 = vpop.f32.mrb[4].mxu0 }
 0x13b   :  { %v1671_v46 = vpop.f32.mrb[4].mxu1  ;;  %v1650_v47 = vpop.f32.mrb[5].mxu0 }
 0x13c   :  { %v1651_v48 = vadd.f32 %v1650_v47, %v1649_v45  ;;  %v1672_v49 = vpop.f32.mrb[5].mxu1  ;;  %v1652_v50 = vpop.f32.mrb[6].mxu0 }
 0x13d   :  { %v1673_v51 = vadd.f32 %v1672_v49, %v1671_v46  ;;  %v1674_v52 = vpop.f32.mrb[6].mxu1  ;;  %v1653_v53 = vpop.f32.mrb[7].mxu0 }
 0x13e   :  { %v1226_v54 = vadd.f32 %v1651_v48, %v1186_v44  ;;  %v1675_v55 = vpop.f32.mrb[7].mxu1 }
 0x140   :  { %v1266_v56 = vadd.f32 %v1673_v51, %v1226_v54 }
 0x15a   :  { %v1693_v57 = vpop.f32.mrb[8].mxu0 }
 0x15b   :  { %v1715_v58 = vpop.f32.mrb[8].mxu1  ;;  %v1694_v59 = vpop.f32.mrb[9].mxu0 }
 0x15c   :  { %v1695_v60 = vadd.f32 %v1694_v59, %v1693_v57  ;;  %v1716_v61 = vpop.f32.mrb[9].mxu1  ;;  %v1696_v62 = vpop.f32.mrb[10].mxu0 }
 0x15d   :  { %v1717_v63 = vadd.f32 %v1716_v61, %v1715_v58  ;;  %v1718_v0 = vpop.f32.mrb[10].mxu1  ;;  %v1697_v1 = vpop.f32.mrb[11].mxu0 }
 0x15e   :  { %v1306_v2 = vadd.f32 %v1695_v60, %v1266_v56  ;;  %v1719_v3 = vpop.f32.mrb[11].mxu1 }
 0x160   :  { %v1346_v4 = vadd.f32 %v1717_v63, %v1306_v2 }
 0x17a   :  { %v1737_v5 = vpop.f32.mrb[12].mxu0 }
 0x17b   :  { %v1759_v6 = vpop.f32.mrb[12].mxu1  ;;  %v1738_v7 = vpop.f32.mrb[13].mxu0 }
 0x17c   :  { %v1760_v8 = vpop.f32.mrb[13].mxu1  ;;  %v1739_v9 = vadd.f32 %v1738_v7, %v1737_v5  ;;  %v1740_v11 = vpop.f32.mrb[14].mxu0 }
 0x17d   :  { %v1761_v10 = vadd.f32 %v1760_v8, %v1759_v6  ;;  %v1762_v12 = vpop.f32.mrb[14].mxu1  ;;  %v1741_v13 = vpop.f32.mrb[15].mxu0 }
 0x17e   :  { %v1763_v14 = vpop.f32.mrb[15].mxu1  ;;  %v1386_v15 = vadd.f32 %v1739_v9, %v1346_v4 }
 0x180   :  { %v1426_v17 = vadd.f32 %v1761_v10, %v1386_v15 }
 0x182   :  { %v1438_v18 = vmul.f32 %v1587_v16, %v1426_v17 }
 0x184   :  { %1439 = vadd.xlane.f32.xlu0 %v1438_v18 }
 0x211   :  { %v1440_v20 = vpop.xlane.xlu0 %1439 }
 0x212   :  { %v1443_v21 = vadd.f32 %v1442_v19, %v1440_v20 }
 0x214   :  { %v1588_v22 = vmul.f32 -1.442695, %v1443_v21 }
 0x216   :  { %1897 = vpow2.f32 %v1588_v22 }
 0x220   :  { %v1898_v23 = vpop.eup %1897 }
 0x221   :  { %v1447_v24 = vadd.f32 1.0, %v1898_v23 }
 0x223   :  { %1899 = vrcp.f32 %v1447_v24 }
 0x22d   :  { %v1900_v25 = vpop.eup %1899 }
 0x22e   :  { %1451 = vst.msk [vmem:[%s2031_s5] sm:$0xff] %vm1450_vm0, %v1900_v25 }
 0x22f   :  { %1456 = vsyncpa [#allocation4], 1 }
 0x230   :  { %1457 = vsyncpa [#allocation6], 1 }

</bundles_post_ra>
